<compile_context>
chip_gen: v5e
topology: v5e:2x2
jax: 0.10.0
libtpu: 0.0.40
codegen_flags: <defaults>
</compile_context>

<pallas_src>
import jax
import jax.numpy as jnp
from jax.experimental import pallas as pl
from jax.experimental.pallas import tpu as pltpu


def _clrelu_kernel(slopes_ref, x_ref, o_ref):
    # slopes_ref: (1, TCL) compute dtype    x_ref / o_ref: (TN, TCL) x.dtype
    v = slopes_ref[...] * x_ref[...].astype(slopes_ref.dtype)   # VPU broadcast-mul
    o_ref[...] = jnp.maximum(v, 0).astype(o_ref.dtype)


def _round_down_to(v: int, g: int) -> int:
    return max(g, (v // g) * g)


def _select_tiles(n: int, cl: int, itemsize: int, target_block_bytes: int):
    """Pick (tn, tcl) so one block is ~target_block_bytes and legally tiled."""
    sub_g = 8 * max(1, 4 // itemsize)       # sublane granule: 8 f32, 16 bf16, 32 int8
    lane_g = 128
    bytes_per_row = cl * itemsize

    if bytes_per_row <= target_block_bytes or cl % lane_g != 0:
        # Full rows fit the budget (or CL can't be lane-tiled) -> tile N only.
        tcl = cl                                             # full extent: always legal
        tn = max(1, target_block_bytes // max(1, bytes_per_row))
        if tn >= n:
            tn = n                                           # full extent
        else:
            tn = min(_round_down_to(tn, sub_g), n)
    else:
        # A single row blows the budget -> tile CL as well.
        tn = n if n < sub_g else sub_g
        per_row_budget = max(1, target_block_bytes // max(1, tn * itemsize))
        tcl = min(cl, _round_down_to(per_row_budget, lane_g))
    return tn, tcl, sub_g


def channel_learnable_relu(x: jax.Array, slopes: jax.Array,
                           *, target_block_bytes: int = 4 * 1024 * 1024) -> jax.Array:
    """x: (N, C, L); slopes: (C,).  Returns max(0, slopes[None, :, None] * x)."""
    N, C, L = x.shape
    CL = C * L
    itemsize = jnp.dtype(x.dtype).itemsize

    # Compute dtype: native bf16/f32 (VPU-supported), everything else promoted to f32.
    if x.dtype == jnp.dtype(jnp.bfloat16) or x.dtype == jnp.dtype(jnp.float32):
        compute_dtype = x.dtype
    else:
        compute_dtype = jnp.float32
    # TODO(synk): output is cast back to x.dtype; strict PyTorch promotion of a
    # low-precision x against f32 parameters would yield an f32 output instead.

    x2 = x.reshape(N, CL)                                        # free, row-major
    slopes_row = jnp.repeat(slopes.astype(compute_dtype), L)[None, :]   # (1, CL)

    tn, tcl, sub_g = _select_tiles(N, CL, itemsize, target_block_bytes)

    # Guarantee >= 2 grid steps for v7x megacore sharding on non-trivial problems.
    total_bytes = N * CL * itemsize
    if pl.cdiv(N, tn) * pl.cdiv(CL, tcl) < 2 and total_bytes > (1 << 20):
        if N >= 2 * sub_g:
            tn = _round_down_to(N // 2, sub_g)
        elif tcl == CL and CL % 128 == 0 and CL >= 256:
            tcl = _round_down_to(CL // 2, 128)

    grid = (pl.cdiv(N, tn), pl.cdiv(CL, tcl))

    out2 = pl.pallas_call(
        _clrelu_kernel,
        out_shape=jax.ShapeDtypeStruct((N, CL), x.dtype),
        grid_spec=pltpu.PrefetchScalarGridSpec(
            num_scalar_prefetch=0,
            grid=grid,
            in_specs=[
                # slope sliver matching the current CL tile (tiny, re-used across N)
                pl.BlockSpec((1, tcl), lambda i, j: (0, j)),
                # x: (tn, tcl) lane-dense slab
                pl.BlockSpec((tn, tcl), lambda i, j: (i, j)),
            ],
            out_specs=pl.BlockSpec((tn, tcl), lambda i, j: (i, j)),
        ),
        compiler_params=pltpu.CompilerParams(
            dimension_semantics=("parallel", "parallel"),
            vmem_limit_bytes=48 * 1024 * 1024,
        ),
    )(slopes_row, x2)

    return out2.reshape(N, C, L)


if __name__ == "__main__":
    # Shapes implied by the module's slopes.view(1, -1, 1): x is (N, C, L).
    N, C, L = 2, 4, 128
    init_slope = 1.0

    key = jax.random.PRNGKey(0)
    x = jax.random.normal(key, (N, C, L), dtype=jnp.float32)

    # Deterministic parameter init, matching torch.full((n_channels,), init_slope),
    # then perturbed per-channel so the broadcast is actually exercised.
    slopes = jnp.full((C,), init_slope, dtype=jnp.float32)
    slopes = slopes * (1.0 + 0.25 * jnp.arange(C, dtype=jnp.float32))

    out = channel_learnable_relu(x, slopes)
    out = jax.block_until_ready(out)

    # Reference check (plain JAX)
    ref = jnp.maximum(0.0, slopes.reshape(1, C, 1) * x)
    assert out.shape == x.shape and out.dtype == x.dtype
    assert jnp.allclose(out, ref, atol=1e-6, rtol=1e-6)

    print("KERNEL_OK")
</pallas_src>

<mosaic_0001>
module attributes {stable_mosaic.version = 11 : i64} {
  func.func @_clrelu_kernel(%arg0: i32, %arg1: i32, %arg2: memref<1x512xf32, #tpu.memory_space<vmem>>, %arg3: memref<2x512xf32, #tpu.memory_space<vmem>>, %arg4: memref<2x512xf32, #tpu.memory_space<vmem>>) attributes {dimension_semantics = [#tpu.dimension_semantics<parallel>, #tpu.dimension_semantics<parallel>], iteration_bounds = array<i64: 1, 1>, scalar_prefetch = 0 : i64, scratch_operands = 0 : i64, tpu.core_type = #tpu.core_type<tc>, window_params = [{transform_indices = @transform_0, window_bounds = array<i64: 1, 512>}, {transform_indices = @transform_1, window_bounds = array<i64: 2, 512>}, {transform_indices = @transform_2, window_bounds = array<i64: 2, 512>}]} {
    %c0 = arith.constant 0 : index
    %c0_0 = arith.constant 0 : index
    %0 = vector.load %arg2[%c0, %c0_0] : memref<1x512xf32, #tpu.memory_space<vmem>>, vector<1x512xf32>
    %c0_1 = arith.constant 0 : index
    %c0_2 = arith.constant 0 : index
    %1 = vector.load %arg3[%c0_1, %c0_2] : memref<2x512xf32, #tpu.memory_space<vmem>>, vector<2x512xf32>
    %2 = vector.broadcast %0 : vector<1x512xf32> to vector<2x512xf32>
    %3 = arith.mulf %2, %1 : vector<2x512xf32>
    %cst = arith.constant 0.000000e+00 : f32
    %4 = vector.broadcast %cst : f32 to vector<2x512xf32>
    %5 = arith.maximumf %3, %4 : vector<2x512xf32>
    %c0_3 = arith.constant 0 : index
    %c0_4 = arith.constant 0 : index
    %6 = vector.load %arg4[%c0_3, %c0_4] : memref<2x512xf32, #tpu.memory_space<vmem>>, vector<2x512xf32>
    tpu.vector_store %arg4[%c0_3, %c0_4], %5 {strides = array<i32>} : memref<2x512xf32, #tpu.memory_space<vmem>>, vector<2x512xf32>,
    return
  }
  func.func @transform_0(%arg0: i32, %arg1: i32) -> (i32, i32) {
    %c0_i32 = arith.constant 0 : i32
    %c0_i32_0 = arith.constant 0 : i32
    return %c0_i32, %arg1 : i32, i32
  }
  func.func @transform_1(%arg0: i32, %arg1: i32) -> (i32, i32) {
    %c0_i32 = arith.constant 0 : i32
    return %arg0, %arg1 : i32, i32
  }
  func.func @transform_2(%arg0: i32, %arg1: i32) -> (i32, i32) {
    %c0_i32 = arith.constant 0 : i32
    return %arg0, %arg1 : i32, i32
  }
}

</mosaic_0001>

<bundles_post_ra>
// kernel: tpu_custom_call.1
= control target key start
LH: loop header
LB: loop body
LE: loop exit
PB: predicated region body
PF: predicated region fallthrough
CT: control target
= control target key end

     0   :  { %7 = vsyncpa [#allocation3], 0  ;;  %s210_s0 = inlined_call_operand.hbm [shape: f32[1,512], index: 0, kind: input, shape index: {}]   ;;  %s211_s1 = inlined_call_operand.hbm [shape: f32[2,512], index: 1, kind: input, shape index: {}]   ;;  %s212_s2 = inlined_call_operand.hbm [shape: f32[2,512], index: 2, kind: output, shape index: {}]  }
   0x1   :  { %8 = vsyncpa [#allocation6], 0 }
   0x2   :  { %9 = vsyncpa [#allocation4], 0  ;;  %s15_s11 = sshll.u32 %s210_s0, 4  ;;  %s183_s12 = smov [#allocation2]   ;;  %s16_s11 = int_to_ptr.hbm [resolvable:$true] %s15_s11 }
   0x3   :  { %s17_s13 = sshll.u32 %s183_s12, 4  ;;  %s26_s16 = sshll.u32 %s211_s1, 4  ;;  %s18_s13 = int_to_ptr.vmem [resolvable:$true] %s17_s13  ;;  %s27_s16 = int_to_ptr.hbm [resolvable:$true] %s26_s16 }
   0x4   :  { %20 = dma.hbm_to_vmem [thread:$0]  %s16_s11, 64, %s18_s13, [#allocation3]  }
   0x5   :  { %s184_s17 = smov [#allocation5]  }
   0x6   :  { %s28_s18 = sshll.u32 %s184_s17, 4  ;;  %s29_s18 = int_to_ptr.vmem [resolvable:$true] %s28_s18 }
   0x7   :  { %31 = dma.hbm_to_vmem [thread:$0]  %s27_s16, 128, %s29_s18, [#allocation6]  }
   0x8   :  { %177 = dma.done.wait [#allocation3], 64  }
   0x9   :  { %178 = vsyncadd [#allocation3], 4294967232 }
   0xa   :  { %179 = dma.done.wait [#allocation6], 128  }
   0xb   :  { %180 = vsyncadd [#allocation6], 4294967168  ;;  %v41_v0 = vld [vmem:[#allocation5] sm:$0xff]  ;;  %v40_v1 = vld [vmem:[#allocation2] sm:$0xf]  ;;  %vm76_vm0 = vcmask 1041408  }
   0xc   :  { %52 = vst [vmem:[#allocation1] ss:$4 sm:$0xff] %v41_v0  ;;  %v43_v2 = vperm.slane %v40_v1, 0  ;;  %v44_v3 = vperm.slane %v40_v1, 1  ;;  %v45_v4 = vperm.slane %v40_v1, 2  ;;  %v46_v5 = vperm.slane %v40_v1, 3 }
   0xd   :  { %vm78_vm1 = vcmask 1045508   ;;  %s185_s0 = smov [#allocation7]   ;;  %s91_s21 = sshll.u32 %s212_s2, 4  ;;  %vm80_vm2 = vcmask 1043456   ;;  %s92_s21 = int_to_ptr.hbm [resolvable:$true] %s91_s21 }
   0xe   :  { %s89_s1 = sshll.u32 %s185_s0, 4  ;;  %s90_s1 = int_to_ptr.vmem [resolvable:$true] %s89_s1 }
  0x13   :  { %v53_v6 = vld.sshfl [vmem:[#allocation1] sm:$0xff pattern:$0x73625140]  ;;  %v54_v7 = vld.sshfl [vmem:[#allocation1 + $0x8] sm:$0xff pattern:$0x73625140] }
  0x14   :  { %v55_v8 = vld.sshfl [vmem:[#allocation1 + $0x10] sm:$0xff pattern:$0x73625140]  ;;  %v56_v9 = vld.sshfl [vmem:[#allocation1 + $0x18] sm:$0xff pattern:$0x73625140]  ;;  %v61_v10 = vmul.f32 %v53_v6, %v43_v2  ;;  %v62_v11 = vmul.f32 %v54_v7, %v44_v3 }
  0x15   :  { %v63_v12 = vmul.f32 %v55_v8, %v45_v4  ;;  %v64_v13 = vmul.f32 %v56_v9, %v46_v5 }
  0x16   :  { %v66_v14 = vmax.f32 %v62_v11, 0.0  ;;  %v65_v17 = vmax.f32 %v61_v10, 0.0 }
  0x17   :  { %v67_v15 = vmax.f32 %v63_v12, 0.0  ;;  %v68_v16 = vmax.f32 %v64_v13, 0.0 }
  0x18   :  { %v73_v18 = vrot.slane %v66_v14, 6 }
  0x19   :  { %v74_v19 = vrot.slane %v67_v15, 4  ;;  %v75_v20 = vrot.slane %v68_v16, 2 }
  0x1a   :  { %v77_v21 = vsel %vm76_vm0, %v65_v17, %v73_v18 }
  0x1b   :  { %v79_v22 = vsel %vm78_vm1, %v74_v19, %v75_v20 }
  0x1c   :  { %v81_v23 = vsel %vm80_vm2, %v77_v21, %v79_v22 }
  0x1d   :  { %83 = vst [vmem:[#allocation7] sm:$0xff] %v81_v23 }
  0x1e   :  { %94 = dma.vmem_to_hbm [thread:$0]  %s90_s1, 128, %s92_s21, [#allocation4]  }
  0x1f   :  { %181 = dma.done.wait [#allocation4], 128  }
  0x20   :  { %182 = vsyncadd [#allocation4], 4294967168 }
  0x21   :  { %99 = vsyncpa [#allocation3], 1 }
  0x22   :  { %100 = vsyncpa [#allocation6], 1 }
  0x23   :  { %101 = vsyncpa [#allocation4], 1 }

</bundles_post_ra>
